<compile_context>
chip_gen: v7x
topology: tpu7x:2x2x1
jax: 0.10.0
libtpu: 0.0.40
codegen_flags: <defaults>
</compile_context>

<pallas_src>
import functools

import jax
import jax.numpy as jnp
from jax.experimental import pallas as pl
from jax.experimental.pallas import tpu as pltpu


def _round_up(n, m):
    return ((n + m - 1) // m) * m


# ----------------------------------------------------------------------------
# Fused Pallas kernel: whole MLP for one batch tile.
# ----------------------------------------------------------------------------
def _netlin1_fused_kernel(x_ref, *refs, num_layers):
    """refs = (w0, b0, w1, b1, ..., w_last, b_last, o_ref).

    hidden layer i < L-1 : w_i (K_in, K_out) bf16,  b_i (1, K_out) f32
    last layer           : w   (1, 128)      bf16,  b   (1, 1)     f32
    """
    o_ref = refs[-1]
    wb = refs[:-1]

    h = x_ref[...]                                # (TB, 576) bf16
    for i in range(num_layers - 1):
        w = wb[2 * i][...]                        # bf16 weights, MXU input
        b = wb[2 * i + 1][...]                    # f32 bias (1, K_out)
        lhs = h if h.dtype == w.dtype else h.astype(w.dtype)
        h = jnp.dot(lhs, w, preferred_element_type=jnp.float32)
        # torch does relu(relu(.)) — idempotent, a single relu is exact.
        h = jnp.maximum(h + b, 0.0)               # f32

    # Final 128 -> 1 layer: VPU elementwise mul + XLU lane reduction
    # (avoids a 1-column MXU matmul).
    w_last = wb[-2][...].astype(jnp.float32)      # (1, 128)
    b_last = wb[-1][...]                          # (1, 1)
    y = jnp.sum(h * w_last, axis=-1, keepdims=True) + b_last
    o_ref[...] = jax.nn.sigmoid(y).astype(o_ref.dtype)


# ----------------------------------------------------------------------------
# Wrapper: prepares operands, builds the grid, calls the fused kernel.
# ----------------------------------------------------------------------------
def netlin1_forward(x, params, *, batch_tile=2048):
    """x: (B, 1, 24, 24) (or anything flattenable to (-1, 576)) -> (B, 1) f32."""
    k0 = params[0][0].shape[0]                    # 576
    # bf16 stream into the kernel: halves the dominant HBM traffic; the MXU
    # input was already bf16 so this is numerics-neutral.
    x = x.reshape(-1, k0).astype(jnp.bfloat16)
    B = x.shape[0]
    num_layers = len(params)

    # ---- operand prep (trace-time, constant-folded by XLA) -----------------
    flat_args = []
    for i, (w_t, b) in enumerate(params):
        if i == num_layers - 1:
            # (128, 1) -> row vector (1, 128) for the VPU/lane-reduce path.
            flat_args.append(w_t.reshape(1, -1).astype(jnp.bfloat16))
            flat_args.append(b.reshape(1, 1).astype(jnp.float32))
        else:
            flat_args.append(w_t.astype(jnp.bfloat16))
            flat_args.append(b.reshape(1, -1).astype(jnp.float32))

    # ---- batch tiling -------------------------------------------------------
    # Large tiles amortize the ~0.35us per-grid-step overhead, but keep the
    # grid >= 2 steps for mid/large batches so v7x's two TensorCores both get
    # work under the "parallel" dimension semantics.
    n_tiles = max(1, pl.cdiv(B, batch_tile))
    if n_tiles == 1 and B > 512:
        n_tiles = 2
    tb = min(batch_tile, _round_up(pl.cdiv(B, n_tiles), 8))  # multiple of 8
    b_pad = _round_up(B, tb)
    if b_pad != B:
        x = jnp.pad(x, ((0, b_pad - B), (0, 0)))
    grid = (b_pad // tb,)

    # x block's last dim (576) equals the full array dim -> no 128-padding
    # needed; Mosaic handles the K=576 contraction on the MXU internally.
    in_specs = [pl.BlockSpec((tb, k0), lambda i: (i, 0))]
    for a in flat_args:
        # Full-array block, constant index_map -> DMA'd once, VMEM-resident
        # across all batch tiles.
        in_specs.append(pl.BlockSpec(a.shape, lambda i: (0, 0)))
    out_spec = pl.BlockSpec((tb, 1), lambda i: (i, 0))

    flops = 2 * B * sum(int(w.shape[0]) * int(w.shape[1]) for (w, _) in params)
    bytes_accessed = (
        int(x.size) * 2                                   # bf16 x stream
        + b_pad * 4                                       # f32 output
        + sum(int(a.size) * a.dtype.itemsize for a in flat_args))

    kernel = functools.partial(_netlin1_fused_kernel, num_layers=num_layers)
    out = pl.pallas_call(
        kernel,
        out_shape=jax.ShapeDtypeStruct((b_pad, 1), jnp.float32),
        grid=grid,
        in_specs=in_specs,
        out_specs=out_spec,
        compiler_params=pltpu.CompilerParams(
            dimension_semantics=("parallel",),
            vmem_limit_bytes=48 * 1024 * 1024),
        cost_estimate=pl.CostEstimate(
            flops=flops, transcendentals=B, bytes_accessed=bytes_accessed),
    )(x, *flat_args)
    return out[:B]


# ----------------------------------------------------------------------------
# Parameter construction (mirrors the nn.Linear stack of Netlin1).
# ----------------------------------------------------------------------------
def make_netlin1_params(sizefirst, key):
    """Returns list of (W_t, b), W_t shape (in, out), b shape (out,), f32."""
    dims = [(1 * 24 * 24, sizefirst)]
    p1, p2 = sizefirst, sizefirst // 2
    while p2 >= 128:
        dims.append((p1, p2))
        p1, p2 = p2, p2 // 2
    dims.append((128, 1))  # same (spec-level) assumption as the PyTorch module

    params = []
    for (fan_in, fan_out) in dims:
        key, kw, kb = jax.random.split(key, 3)
        bound = 1.0 / jnp.sqrt(jnp.float32(fan_in))
        w_t = jax.random.uniform(kw, (fan_in, fan_out), jnp.float32, -bound, bound)
        b = jax.random.uniform(kb, (fan_out,), jnp.float32, -bound, bound)
        params.append((w_t, b))
    return params


def _reference_forward_f32(x, params):
    """Pure-JAX f32 reference of the PyTorch module."""
    x = x.reshape(-1, 24 * 24).astype(jnp.float32)
    for i, (w_t, b) in enumerate(params):
        y = x @ w_t + b
        if i == len(params) - 1:
            return jax.nn.sigmoid(y)
        x = jnp.maximum(y, 0.0)


def _reference_forward_bf16(x, params):
    """Pure-JAX reference that mimics the kernel's bf16-weight numerics."""
    h = x.reshape(-1, 24 * 24).astype(jnp.bfloat16)
    for (w_t, b) in params[:-1]:
        y = jnp.dot(h.astype(jnp.bfloat16), w_t.astype(jnp.bfloat16),
                    preferred_element_type=jnp.float32)
        h = jnp.maximum(y + b.astype(jnp.float32), 0.0)        # f32
    w_last, b_last = params[-1]
    w_row = w_last.reshape(1, -1).astype(jnp.bfloat16).astype(jnp.float32)
    y = jnp.sum(h * w_row, axis=-1, keepdims=True) + b_last.reshape(1, 1)
    return jax.nn.sigmoid(y)


# ----------------------------------------------------------------------------
if __name__ == "__main__":
    key = jax.random.PRNGKey(0)
    k_params, k_x = jax.random.split(key)

    sizefirst = 512  # layers: 576->512, 512->256, 256->128, 128->1
    params = make_netlin1_params(sizefirst, k_params)

    batch = 2
    x = jax.random.normal(k_x, (batch, 1, 24, 24), jnp.float32)

    fwd = jax.jit(netlin1_forward)
    y = fwd(x, params)
    jax.block_until_ready(y)

    assert y.shape == (batch, 1), y.shape
    assert bool(jnp.all((y >= 0.0) & (y <= 1.0)))  # sigmoid output range
    # Loose check vs f32 reference (kernel uses bf16 weights/activations).
    y_f32 = _reference_forward_f32(x, params)
    assert bool(jnp.max(jnp.abs(y - y_f32)) < 5e-2), jnp.max(jnp.abs(y - y_f32))
    # Tight check vs a reference that mimics the kernel's bf16 numerics.
    y_bf16 = _reference_forward_bf16(x, params)
    assert bool(jnp.max(jnp.abs(y - y_bf16)) < 1e-3), jnp.max(jnp.abs(y - y_bf16))
    print("KERNEL_OK")
</pallas_src>

<mosaic_0001>
module attributes {stable_mosaic.version = 11 : i64} {
  func.func @_netlin1_fused_kernel(%arg0: i32, %arg1: memref<8x576xbf16, #tpu.memory_space<vmem>>, %arg2: memref<576x512xbf16, #tpu.memory_space<vmem>>, %arg3: memref<1x512xf32, #tpu.memory_space<vmem>>, %arg4: memref<512x256xbf16, #tpu.memory_space<vmem>>, %arg5: memref<1x256xf32, #tpu.memory_space<vmem>>, %arg6: memref<256x128xbf16, #tpu.memory_space<vmem>>, %arg7: memref<1x128xf32, #tpu.memory_space<vmem>>, %arg8: memref<1x128xbf16, #tpu.memory_space<vmem>>, %arg9: memref<1x1xf32, #tpu.memory_space<vmem>>, %arg10: memref<8x1xf32, #tpu.memory_space<vmem>>) attributes {dimension_semantics = [#tpu.dimension_semantics<parallel>], iteration_bounds = array<i64: 1>, scalar_prefetch = 0 : i64, scratch_operands = 0 : i64, tpu.core_type = #tpu.core_type<tc>, window_params = [{transform_indices = @transform_0, window_bounds = array<i64: 8, 576>}, {pipeline_mode = #tpu.pipeline_mode<synchronous>, transform_indices = @transform_1, window_bounds = array<i64: 576, 512>}, {pipeline_mode = #tpu.pipeline_mode<synchronous>, transform_indices = @transform_2, window_bounds = array<i64: 1, 512>}, {pipeline_mode = #tpu.pipeline_mode<synchronous>, transform_indices = @transform_3, window_bounds = array<i64: 512, 256>}, {pipeline_mode = #tpu.pipeline_mode<synchronous>, transform_indices = @transform_4, window_bounds = array<i64: 1, 256>}, {pipeline_mode = #tpu.pipeline_mode<synchronous>, transform_indices = @transform_5, window_bounds = array<i64: 256, 128>}, {pipeline_mode = #tpu.pipeline_mode<synchronous>, transform_indices = @transform_6, window_bounds = array<i64: 1, 128>}, {pipeline_mode = #tpu.pipeline_mode<synchronous>, transform_indices = @transform_7, window_bounds = array<i64: 1, 128>}, {pipeline_mode = #tpu.pipeline_mode<synchronous>, transform_indices = @transform_8, window_bounds = array<i64: 1, 1>}, {transform_indices = @transform_9, window_bounds = array<i64: 8, 1>}]} {
    %c0 = arith.constant 0 : index
    %c0_0 = arith.constant 0 : index
    %0 = vector.load %arg1[%c0, %c0_0] : memref<8x576xbf16, #tpu.memory_space<vmem>>, vector<8x576xbf16>
    %c0_1 = arith.constant 0 : index
    %c0_2 = arith.constant 0 : index
    %1 = vector.load %arg2[%c0_1, %c0_2] : memref<576x512xbf16, #tpu.memory_space<vmem>>, vector<576x512xbf16>
    %c0_3 = arith.constant 0 : index
    %c0_4 = arith.constant 0 : index
    %2 = vector.load %arg3[%c0_3, %c0_4] : memref<1x512xf32, #tpu.memory_space<vmem>>, vector<1x512xf32>
    %cst = arith.constant dense<0.000000e+00> : vector<8x512xf32>
    %3 = tpu.matmul %0, %1, %cst {dimension_numbers = #tpu.dot_dimension_numbers<[1], [0], [0], [1], [0, 0, 1, 1], [], []>} : vector<8x576xbf16>, vector<576x512xbf16>, vector<8x512xf32> -> vector<8x512xf32>
    %4 = vector.broadcast %2 : vector<1x512xf32> to vector<8x512xf32>
    %5 = arith.addf %3, %4 : vector<8x512xf32>
    %cst_5 = arith.constant 0.000000e+00 : f32
    %6 = vector.broadcast %cst_5 : f32 to vector<8x512xf32>
    %7 = arith.maximumf %5, %6 : vector<8x512xf32>
    %c0_6 = arith.constant 0 : index
    %c0_7 = arith.constant 0 : index
    %8 = vector.load %arg4[%c0_6, %c0_7] : memref<512x256xbf16, #tpu.memory_space<vmem>>, vector<512x256xbf16>
    %c0_8 = arith.constant 0 : index
    %c0_9 = arith.constant 0 : index
    %9 = vector.load %arg5[%c0_8, %c0_9] : memref<1x256xf32, #tpu.memory_space<vmem>>, vector<1x256xf32>
    %10 = arith.truncf %7 : vector<8x512xf32> to vector<8x512xbf16>
    %cst_10 = arith.constant dense<0.000000e+00> : vector<8x256xf32>
    %11 = tpu.matmul %10, %8, %cst_10 {dimension_numbers = #tpu.dot_dimension_numbers<[1], [0], [0], [1], [0, 0, 1, 1], [], []>} : vector<8x512xbf16>, vector<512x256xbf16>, vector<8x256xf32> -> vector<8x256xf32>
    %12 = vector.broadcast %9 : vector<1x256xf32> to vector<8x256xf32>
    %13 = arith.addf %11, %12 : vector<8x256xf32>
    %cst_11 = arith.constant 0.000000e+00 : f32
    %14 = vector.broadcast %cst_11 : f32 to vector<8x256xf32>
    %15 = arith.maximumf %13, %14 : vector<8x256xf32>
    %c0_12 = arith.constant 0 : index
    %c0_13 = arith.constant 0 : index
    %16 = vector.load %arg6[%c0_12, %c0_13] : memref<256x128xbf16, #tpu.memory_space<vmem>>, vector<256x128xbf16>
    %c0_14 = arith.constant 0 : index
    %c0_15 = arith.constant 0 : index
    %17 = vector.load %arg7[%c0_14, %c0_15] : memref<1x128xf32, #tpu.memory_space<vmem>>, vector<1x128xf32>
    %18 = arith.truncf %15 : vector<8x256xf32> to vector<8x256xbf16>
    %cst_16 = arith.constant dense<0.000000e+00> : vector<8x128xf32>
    %19 = tpu.matmul %18, %16, %cst_16 {dimension_numbers = #tpu.dot_dimension_numbers<[1], [0], [0], [1], [0, 0, 1, 1], [], []>} : vector<8x256xbf16>, vector<256x128xbf16>, vector<8x128xf32> -> vector<8x128xf32>
    %20 = vector.broadcast %17 : vector<1x128xf32> to vector<8x128xf32>
    %21 = arith.addf %19, %20 : vector<8x128xf32>
    %cst_17 = arith.constant 0.000000e+00 : f32
    %22 = vector.broadcast %cst_17 : f32 to vector<8x128xf32>
    %23 = arith.maximumf %21, %22 : vector<8x128xf32>
    %c0_18 = arith.constant 0 : index
    %c0_19 = arith.constant 0 : index
    %24 = vector.load %arg8[%c0_18, %c0_19] : memref<1x128xbf16, #tpu.memory_space<vmem>>, vector<1x128xbf16>
    %25 = arith.extf %24 : vector<1x128xbf16> to vector<1x128xf32>
    %c0_20 = arith.constant 0 : index
    %c0_21 = arith.constant 0 : index
    %26 = vector.load %arg9[%c0_20, %c0_21] : memref<1x1xf32, #tpu.memory_space<vmem>>, vector<1x1xf32>
    %27 = vector.broadcast %25 : vector<1x128xf32> to vector<8x128xf32>
    %28 = arith.mulf %23, %27 : vector<8x128xf32>
    %cst_22 = arith.constant dense<0.000000e+00> : vector<8xf32>
    %29 = vector.multi_reduction <add>, %28, %cst_22 [1] : vector<8x128xf32> to vector<8xf32>
    %30 = vector.shape_cast %29 : vector<8xf32> to vector<8x1xf32>
    %31 = vector.broadcast %26 : vector<1x1xf32> to vector<8x1xf32>
    %32 = arith.addf %30, %31 : vector<8x1xf32>
    %33 = arith.negf %32 : vector<8x1xf32>
    %34 = math.exp %33 : vector<8x1xf32>
    %cst_23 = arith.constant 1.000000e+00 : f32
    %35 = vector.broadcast %cst_23 : f32 to vector<8x1xf32>
    %36 = arith.addf %35, %34 : vector<8x1xf32>
    %37 = arith.divf %35, %36 : vector<8x1xf32>
    %c0_24 = arith.constant 0 : index
    %c0_25 = arith.constant 0 : index
    %38 = vector.load %arg10[%c0_24, %c0_25] : memref<8x1xf32, #tpu.memory_space<vmem>>, vector<8x1xf32>
    tpu.vector_store %arg10[%c0_24, %c0_25], %37 {strides = array<i32>} : memref<8x1xf32, #tpu.memory_space<vmem>>, vector<8x1xf32>,
    return
  }
  func.func @transform_0(%arg0: i32) -> (i32, i32) {
    %c0_i32 = arith.constant 0 : i32
    %c0_i32_0 = arith.constant 0 : i32
    return %arg0, %c0_i32 : i32, i32
  }
  func.func @transform_1(%arg0: i32) -> (i32, i32) {
    %c0_i32 = arith.constant 0 : i32
    %c0_i32_0 = arith.constant 0 : i32
    %c0_i32_1 = arith.constant 0 : i32
    return %c0_i32, %c0_i32_0 : i32, i32
  }
  func.func @transform_2(%arg0: i32) -> (i32, i32) {
    %c0_i32 = arith.constant 0 : i32
    %c0_i32_0 = arith.constant 0 : i32
    %c0_i32_1 = arith.constant 0 : i32
    return %c0_i32, %c0_i32_0 : i32, i32
  }
  func.func @transform_3(%arg0: i32) -> (i32, i32) {
    %c0_i32 = arith.constant 0 : i32
    %c0_i32_0 = arith.constant 0 : i32
    %c0_i32_1 = arith.constant 0 : i32
    return %c0_i32, %c0_i32_0 : i32, i32
  }
  func.func @transform_4(%arg0: i32) -> (i32, i32) {
    %c0_i32 = arith.constant 0 : i32
    %c0_i32_0 = arith.constant 0 : i32
    %c0_i32_1 = arith.constant 0 : i32
    return %c0_i32, %c0_i32_0 : i32, i32
  }
  func.func @transform_5(%arg0: i32) -> (i32, i32) {
    %c0_i32 = arith.constant 0 : i32
    %c0_i32_0 = arith.constant 0 : i32
    %c0_i32_1 = arith.constant 0 : i32
    return %c0_i32, %c0_i32_0 : i32, i32
  }
  func.func @transform_6(%arg0: i32) -> (i32, i32) {
    %c0_i32 = arith.constant 0 : i32
    %c0_i32_0 = arith.constant 0 : i32
    %c0_i32_1 = arith.constant 0 : i32
    return %c0_i32, %c0_i32_0 : i32, i32
  }
  func.func @transform_7(%arg0: i32) -> (i32, i32) {
    %c0_i32 = arith.constant 0 : i32
    %c0_i32_0 = arith.constant 0 : i32
    %c0_i32_1 = arith.constant 0 : i32
    return %c0_i32, %c0_i32_0 : i32, i32
  }
  func.func @transform_8(%arg0: i32) -> (i32, i32) {
    %c0_i32 = arith.constant 0 : i32
    %c0_i32_0 = arith.constant 0 : i32
    %c0_i32_1 = arith.constant 0 : i32
    return %c0_i32, %c0_i32_0 : i32, i32
  }
  func.func @transform_9(%arg0: i32) -> (i32, i32) {
    %c0_i32 = arith.constant 0 : i32
    %c0_i32_0 = arith.constant 0 : i32
    return %arg0, %c0_i32 : i32, i32
  }
}

</mosaic_0001>

<bundles_post_ra>
// kernel: netlin1_forward.1
= control target key start
LH: loop header
LB: loop body
LE: loop exit
PB: predicated region body
PF: predicated region fallthrough
CT: control target
= control target key end

     0   :  { %vm941_vm0 = vcmask 523264   ;;  %vm1880_vm1 = vcmask 7168   ;;  %s3291_s1 = inlined_call_operand.vmem [shape: bf16[576,512], index: 1, kind: input, shape index: {}]   ;;  %s3292_s0 = inlined_call_operand.vmem [shape: bf16[8,576], index: 0, kind: input, shape index: {}]   ;;  %s3293_s3 = inlined_call_operand.vmem [shape: bf16[512,256], index: 3, kind: input, shape index: {}]   ;;  %s3294_s2 = inlined_call_operand.vmem [shape: f32[1,512], index: 2, kind: input, shape index: {}]   ;;  %s3295_s5 = inlined_call_operand.vmem [shape: bf16[256,128], index: 5, kind: input, shape index: {}]   ;;  %s3296_s4 = inlined_call_operand.vmem [shape: f32[1,256], index: 4, kind: input, shape index: {}]   ;;  %s3297_s8 = inlined_call_operand.<no memory space> [shape: f32[1,1], index: 8, kind: input, shape index: {}]   ;;  %s3298_s7 = inlined_call_operand.vmem [shape: bf16[1,128], index: 7, kind: input, shape index: {}]   ;;  %s3299_s6 = inlined_call_operand.vmem [shape: f32[1,128], index: 6, kind: input, shape index: {}]   ;;  %s3300_s9 = inlined_call_operand.vmem [shape: f32[8,1], index: 9, kind: output, shape index: {}]  }
   0x1   :  { %v2165_v0 = vld [vmem:[%s3291_s1 + $0x4] ss:$16 sps:$4 sm:$0xff]   ;;  %v2169_v2 = vld [vmem:[%s3291_s1] ss:$16 sps:$4 sm:$0xff]   ;;  %v36_v50 = vld [vmem:[%s3292_s0 + $0x8] sm:$0xff] }
   0x2   :  { %v2167_v1 = vld [vmem:[%s3291_s1 + $0x204] ss:$16 sps:$4 sm:$0xff]   ;;  %945 = vmatprep.subr.bf16.mxu1 %v2165_v0  ;;  %v2170_v3 = vld [vmem:[%s3291_s1 + $0x200] ss:$16 sps:$4 sm:$0xff]   ;;  %v2708_v52 = vcombine.high %v36_v50, %v36_v50 }
   0x3   :  { %986 = vmatprep.subr.bf16.mxu0 %v2167_v1  ;;  %v2171_v4 = vld [vmem:[%s3291_s1 + $0x24] ss:$16 sps:$4 sm:$0xff]   ;;  %946 = vmatpush1.bf16.msra.mxu1 %v2169_v2  ;;  %v2175_v6 = vld [vmem:[%s3291_s1 + $0x20] ss:$16 sps:$4 sm:$0xff]  }
   0x4   :  { %987 = vmatpush1.bf16.msra.mxu0 %v2170_v3  ;;  %v2173_v5 = vld [vmem:[%s3291_s1 + $0x224] ss:$16 sps:$4 sm:$0xff]   ;;  %947 = vmatprep.subr.bf16.mxu1 %v2171_v4  ;;  %v2176_v7 = vld [vmem:[%s3291_s1 + $0x220] ss:$16 sps:$4 sm:$0xff]  }
   0x5   :  { %988 = vmatprep.subr.bf16.mxu0 %v2173_v5  ;;  %v2177_v8 = vld [vmem:[%s3291_s1 + $0x44] ss:$16 sps:$4 sm:$0xff]   ;;  %v2181_v10 = vld [vmem:[%s3291_s1 + $0x40] ss:$16 sps:$4 sm:$0xff]   ;;  %1018 = vmatprep.mubr.bf16.mxu0 %v2708_v52  ;;  %v2271_v5 = vld [vmem:[%s3291_s1 + $0xc] ss:$16 sps:$4 sm:$0xff]  }
   0x6   :  { %v2179_v9 = vld [vmem:[%s3291_s1 + $0x244] ss:$16 sps:$4 sm:$0xff]   ;;  %v2182_v11 = vld [vmem:[%s3291_s1 + $0x240] ss:$16 sps:$4 sm:$0xff]  }
   0x7   :  { %948 = vmatpush1.bf16.msra.mxu1 %v2175_v6  ;;  %v2183_v12 = vld [vmem:[%s3291_s1 + $0x64] ss:$16 sps:$4 sm:$0xff]   ;;  %v2187_v14 = vld [vmem:[%s3291_s1 + $0x60] ss:$16 sps:$4 sm:$0xff]  }
   0x8   :  { %989 = vmatpush1.bf16.msra.mxu0 %v2176_v7  ;;  %949 = vmatprep.subr.bf16.mxu1 %v2177_v8  ;;  %v2185_v13 = vld [vmem:[%s3291_s1 + $0x264] ss:$16 sps:$4 sm:$0xff]   ;;  %v2188_v15 = vld [vmem:[%s3291_s1 + $0x260] ss:$16 sps:$4 sm:$0xff]   ;;  %v2765_v7 = vcombine.low %v36_v50, %v36_v50 }
   0x9   :  { %990 = vmatprep.subr.bf16.mxu0 %v2179_v9  ;;  %v2189_v16 = vld [vmem:[%s3291_s1 + $0x84] ss:$16 sps:$4 sm:$0xff]   ;;  %v2193_v18 = vld [vmem:[%s3291_s1 + $0x80] ss:$16 sps:$4 sm:$0xff]   ;;  %v2269_v9 = vld [vmem:[%s3291_s1 + $0x8] ss:$16 sps:$4 sm:$0xff]  }
   0xa   :  { %v2191_v17 = vld [vmem:[%s3291_s1 + $0x284] ss:$16 sps:$4 sm:$0xff]   ;;  %v2194_v19 = vld [vmem:[%s3291_s1 + $0x280] ss:$16 sps:$4 sm:$0xff]  }
   0xb   :  { %950 = vmatpush1.bf16.msra.mxu1 %v2181_v10  ;;  %v2195_v20 = vld [vmem:[%s3291_s1 + $0xa4] ss:$16 sps:$4 sm:$0xff]   ;;  %v2199_v22 = vld [vmem:[%s3291_s1 + $0xa0] ss:$16 sps:$4 sm:$0xff]  }
   0xc   :  { %991 = vmatpush1.bf16.msra.mxu0 %v2182_v11  ;;  %951 = vmatprep.subr.bf16.mxu1 %v2183_v12  ;;  %v2197_v21 = vld [vmem:[%s3291_s1 + $0x2a4] ss:$16 sps:$4 sm:$0xff]   ;;  %v2200_v23 = vld [vmem:[%s3291_s1 + $0x2a0] ss:$16 sps:$4 sm:$0xff]   ;;  %v2277_v11 = vld [vmem:[%s3291_s1 + $0x2c] ss:$16 sps:$4 sm:$0xff]  }
   0xd   :  { %992 = vmatprep.subr.bf16.mxu0 %v2185_v13  ;;  %v2201_v24 = vld [vmem:[%s3291_s1 + $0xc4] ss:$16 sps:$4 sm:$0xff]   ;;  %v2205_v26 = vld [vmem:[%s3291_s1 + $0xc0] ss:$16 sps:$4 sm:$0xff]   ;;  %v2275_v13 = vld [vmem:[%s3291_s1 + $0x28] ss:$16 sps:$4 sm:$0xff]  }
   0xe   :  { %v2203_v25 = vld [vmem:[%s3291_s1 + $0x2c4] ss:$16 sps:$4 sm:$0xff]   ;;  %v2206_v27 = vld [vmem:[%s3291_s1 + $0x2c0] ss:$16 sps:$4 sm:$0xff]  }
   0xf   :  { %952 = vmatpush1.bf16.msra.mxu1 %v2187_v14  ;;  %v2207_v28 = vld [vmem:[%s3291_s1 + $0xe4] ss:$16 sps:$4 sm:$0xff]   ;;  %v2211_v30 = vld [vmem:[%s3291_s1 + $0xe0] ss:$16 sps:$4 sm:$0xff]  }
  0x10   :  { %993 = vmatpush1.bf16.msra.mxu0 %v2188_v15  ;;  %953 = vmatprep.subr.bf16.mxu1 %v2189_v16  ;;  %v2209_v29 = vld [vmem:[%s3291_s1 + $0x2e4] ss:$16 sps:$4 sm:$0xff]   ;;  %v2212_v31 = vld [vmem:[%s3291_s1 + $0x2e0] ss:$16 sps:$4 sm:$0xff]   ;;  %v2283_v15 = vld [vmem:[%s3291_s1 + $0x4c] ss:$16 sps:$4 sm:$0xff]  }
  0x11   :  { %994 = vmatprep.subr.bf16.mxu0 %v2191_v17  ;;  %v2213_v32 = vld [vmem:[%s3291_s1 + $0x104] ss:$16 sps:$4 sm:$0xff]   ;;  %v2217_v34 = vld [vmem:[%s3291_s1 + $0x100] ss:$16 sps:$4 sm:$0xff]   ;;  %v2502_v16 = vmov 0  }
  0x12   :  { %v2215_v33 = vld [vmem:[%s3291_s1 + $0x304] ss:$16 sps:$4 sm:$0xff]   ;;  %v2218_v35 = vld [vmem:[%s3291_s1 + $0x300] ss:$16 sps:$4 sm:$0xff]  }
  0x13   :  { %954 = vmatpush1.bf16.msra.mxu1 %v2193_v18  ;;  %v2219_v36 = vld [vmem:[%s3291_s1 + $0x124] ss:$16 sps:$4 sm:$0xff]   ;;  %v2223_v38 = vld [vmem:[%s3291_s1 + $0x120] ss:$16 sps:$4 sm:$0xff]   ;;  %v2281_v18 = vld [vmem:[%s3291_s1 + $0x48] ss:$16 sps:$4 sm:$0xff]  }
  0x14   :  { %995 = vmatpush1.bf16.msra.mxu0 %v2194_v19  ;;  %955 = vmatprep.subr.bf16.mxu1 %v2195_v20  ;;  %v2221_v37 = vld [vmem:[%s3291_s1 + $0x324] ss:$16 sps:$4 sm:$0xff]   ;;  %v2224_v39 = vld [vmem:[%s3291_s1 + $0x320] ss:$16 sps:$4 sm:$0xff]   ;;  %v2289_v20 = vld [vmem:[%s3291_s1 + $0x6c] ss:$16 sps:$4 sm:$0xff]  }
  0x15   :  { %996 = vmatprep.subr.bf16.mxu0 %v2197_v21  ;;  %v2225_v40 = vld [vmem:[%s3291_s1 + $0x144] ss:$16 sps:$4 sm:$0xff]   ;;  %v2229_v42 = vld [vmem:[%s3291_s1 + $0x140] ss:$16 sps:$4 sm:$0xff]  }
  0x16   :  { %v2227_v41 = vld [vmem:[%s3291_s1 + $0x344] ss:$16 sps:$4 sm:$0xff]   ;;  %v2230_v43 = vld [vmem:[%s3291_s1 + $0x340] ss:$16 sps:$4 sm:$0xff]  }
  0x17   :  { %956 = vmatpush1.bf16.msra.mxu1 %v2199_v22  ;;  %v2231_v44 = vld [vmem:[%s3291_s1 + $0x164] ss:$16 sps:$4 sm:$0xff]   ;;  %v2235_v46 = vld [vmem:[%s3291_s1 + $0x160] ss:$16 sps:$4 sm:$0xff]   ;;  %v2287_v22 = vld [vmem:[%s3291_s1 + $0x68] ss:$16 sps:$4 sm:$0xff]  }
  0x18   :  { %997 = vmatpush1.bf16.msra.mxu0 %v2200_v23  ;;  %957 = vmatprep.subr.bf16.mxu1 %v2201_v24  ;;  %v2233_v45 = vld [vmem:[%s3291_s1 + $0x364] ss:$16 sps:$4 sm:$0xff]   ;;  %v2236_v48 = vld [vmem:[%s3291_s1 + $0x360] ss:$16 sps:$4 sm:$0xff]   ;;  %v2292_v23 = vld [vmem:[%s3291_s1 + $0x8c] ss:$16 sps:$4 sm:$0xff]  }
  0x19   :  { %998 = vmatprep.subr.bf16.mxu0 %v2203_v25  ;;  %v35_v47 = vld [vmem:[%s3292_s0] sm:$0xff]  ;;  %v2263_v24 = vld [vmem:[%s3292_s0 + $0x10] ss:$0 sps:$4 sm:$0xff]   ;;  %v2290_v25 = vld [vmem:[%s3291_s1 + $0x88] ss:$16 sps:$4 sm:$0xff]  }
  0x1a   :  { %v2700_v49 = vcombine.high %v35_v47, %v35_v47  ;;  %v2237_v51 = vld [vmem:[%s3291_s1 + $0x184] ss:$16 sps:$4 sm:$0xff]   ;;  %v2241_v54 = vld [vmem:[%s3291_s1 + $0x180] ss:$16 sps:$4 sm:$0xff]   ;;  %v2763_v6 = vcombine.low %v35_v47, %v35_v47 }
  0x1b   :  { %958 = vmatpush1.bf16.msra.mxu1 %v2205_v26  ;;  %v2239_v53 = vld [vmem:[%s3291_s1 + $0x384] ss:$16 sps:$4 sm:$0xff]   ;;  %v2242_v55 = vld [vmem:[%s3291_s1 + $0x380] ss:$16 sps:$4 sm:$0xff]   ;;  %v2295_v26 = vld [vmem:[%s3291_s1 + $0xac] ss:$16 sps:$4 sm:$0xff]  }
  0x1c   :  { %999 = vmatpush1.bf16.msra.mxu0 %v2206_v27  ;;  %959 = vmatprep.subr.bf16.mxu1 %v2207_v28  ;;  %v2243_v56 = vld [vmem:[%s3291_s1 + $0x1a4] ss:$16 sps:$4 sm:$0xff]   ;;  %v2247_v58 = vld [vmem:[%s3291_s1 + $0x1a0] ss:$16 sps:$4 sm:$0xff]   ;;  %v2293_v27 = vld [vmem:[%s3291_s1 + $0xa8] ss:$16 sps:$4 sm:$0xff]  }
  0x1d   :  { %1000 = vmatprep.subr.bf16.mxu0 %v2209_v29  ;;  %977 = vmatprep.mubr.bf16.mxu1 %v2700_v49  ;;  %v2245_v57 = vld [vmem:[%s3291_s1 + $0x3a4] ss:$16 sps:$4 sm:$0xff]   ;;  %v2248_v59 = vld [vmem:[%s3291_s1 + $0x3a0] ss:$16 sps:$4 sm:$0xff]   ;;  %v2298_v28 = vld [vmem:[%s3291_s1 + $0xcc] ss:$16 sps:$4 sm:$0xff]  }
  0x1e   :  { %v2249_v60 = vld [vmem:[%s3291_s1 + $0x1c4] ss:$16 sps:$4 sm:$0xff]   ;;  %v2253_v62 = vld [vmem:[%s3291_s1 + $0x1c0] ss:$16 sps:$4 sm:$0xff]   ;;  %v2362_v29 = vld [vmem:[%s3291_s1 + $0x408] ss:$16 sps:$4 sm:$0xff]  }
  0x1f   :  { %960 = vmatpush1.bf16.msra.mxu1 %v2211_v30  ;;  %v2251_v61 = vld [vmem:[%s3291_s1 + $0x3c4] ss:$16 sps:$4 sm:$0xff]   ;;  %v2254_v63 = vld [vmem:[%s3291_s1 + $0x3c0] ss:$16 sps:$4 sm:$0xff]   ;;  %v2364_v30 = vld [vmem:[%s3291_s1 + $0x40c] ss:$16 sps:$4 sm:$0xff]  }
  0x20   :  { %1001 = vmatpush1.bf16.msra.mxu0 %v2212_v31  ;;  %961 = vmatprep.subr.bf16.mxu1 %v2213_v32  ;;  %v2255_v0 = vld [vmem:[%s3291_s1 + $0x1e4] ss:$16 sps:$4 sm:$0xff]   ;;  %v2259_v2 = vld [vmem:[%s3291_s1 + $0x1e0] ss:$16 sps:$4 sm:$0xff]   ;;  %v2296_v31 = vld [vmem:[%s3291_s1 + $0xc8] ss:$16 sps:$4 sm:$0xff]  }
  0x21   :  { %1002 = vmatprep.subr.bf16.mxu0 %v2215_v33  ;;  %v2257_v1 = vld [vmem:[%s3291_s1 + $0x3e4] ss:$16 sps:$4 sm:$0xff]   ;;  %v2260_v3 = vld [vmem:[%s3291_s1 + $0x3e0] ss:$16 sps:$4 sm:$0xff]   ;;  %v2301_v32 = vld [vmem:[%s3291_s1 + $0xec] ss:$16 sps:$4 sm:$0xff]  }
  0x22   :  { %v2268_v4 = vld [vmem:[%s3291_s1 + $0x404] ss:$16 sps:$4 sm:$0xff]   ;;  %v2266_v8 = vld [vmem:[%s3291_s1 + $0x400] ss:$16 sps:$4 sm:$0xff]   ;;  %v2368_v33 = vld [vmem:[%s3291_s1 + $0x428] ss:$16 sps:$4 sm:$0xff]  }
  0x23   :  { %962 = vmatpush1.bf16.msra.mxu1 %v2217_v34  ;;  %v2274_v10 = vld [vmem:[%s3291_s1 + $0x424] ss:$16 sps:$4 sm:$0xff]   ;;  %v2272_v12 = vld [vmem:[%s3291_s1 + $0x420] ss:$16 sps:$4 sm:$0xff]   ;;  %v2370_v34 = vld [vmem:[%s3291_s1 + $0x42c] ss:$16 sps:$4 sm:$0xff]  }
  0x24   :  { %1003 = vmatpush1.bf16.msra.mxu0 %v2218_v35  ;;  %963 = vmatprep.subr.bf16.mxu1 %v2219_v36  ;;  %v2280_v14 = vld [vmem:[%s3291_s1 + $0x444] ss:$16 sps:$4 sm:$0xff]   ;;  %v2278_v17 = vld [vmem:[%s3291_s1 + $0x440] ss:$16 sps:$4 sm:$0xff]   ;;  %v2299_v35 = vld [vmem:[%s3291_s1 + $0xe8] ss:$16 sps:$4 sm:$0xff]  }
  0x25   :  { %1004 = vmatprep.subr.bf16.mxu0 %v2221_v37  ;;  %v2286_v19 = vld [vmem:[%s3291_s1 + $0x464] ss:$16 sps:$4 sm:$0xff]   ;;  %v2284_v21 = vld [vmem:[%s3291_s1 + $0x460] ss:$16 sps:$4 sm:$0xff]   ;;  %v2304_v36 = vld [vmem:[%s3291_s1 + $0x10c] ss:$16 sps:$4 sm:$0xff]  }
  0x26   :  { %v2376_v37 = vld [vmem:[%s3291_s1 + $0x44c] ss:$16 sps:$4 sm:$0xff]   ;;  %v2389_v50 = vld [vmem:[%s3293_s3 + $0x10] ss:$8 sps:$4 sm:$0xff]  }
  0x27   :  { %964 = vmatpush1.bf16.msra.mxu1 %v2223_v38  ;;  %v2374_v38 = vld [vmem:[%s3291_s1 + $0x448] ss:$16 sps:$4 sm:$0xff]   ;;  %v2391_v47 = vld [vmem:[%s3293_s3 + $0x14] ss:$8 sps:$4 sm:$0xff]  }
  0x28   :  { %1005 = vmatpush1.bf16.msra.mxu0 %v2224_v39  ;;  %965 = vmatprep.subr.bf16.mxu1 %v2225_v40  ;;  %v2382_v39 = vld [vmem:[%s3291_s1 + $0x46c] ss:$16 sps:$4 sm:$0xff]   ;;  %v2302_v40 = vld [vmem:[%s3291_s1 + $0x108] ss:$16 sps:$4 sm:$0xff]  }
  0x29   :  { %1006 = vmatprep.subr.bf16.mxu0 %v2227_v41  ;;  %v2307_v41 = vld [vmem:[%s3291_s1 + $0x12c] ss:$16 sps:$4 sm:$0xff]  }
  0x2b   :  { %966 = vmatpush1.bf16.msra.mxu1 %v2229_v42  ;;  %v2380_v42 = vld [vmem:[%s3291_s1 + $0x468] ss:$16 sps:$4 sm:$0xff]  }
  0x2c   :  { %1007 = vmatpush1.bf16.msra.mxu0 %v2230_v43  ;;  %967 = vmatprep.subr.bf16.mxu1 %v2231_v44  ;;  %v2388_v43 = vld [vmem:[%s3293_s3 + $0x4] ss:$8 sps:$4 sm:$0xff]   ;;  %v2305_v44 = vld [vmem:[%s3291_s1 + $0x128] ss:$16 sps:$4 sm:$0xff]  }
  0x2d   :  { %1008 = vmatprep.subr.bf16.mxu0 %v2233_v45  ;;  %v2310_v45 = vld [vmem:[%s3291_s1 + $0x14c] ss:$16 sps:$4 sm:$0xff]  }
  0x2f   :  { %968 = vmatpush1.bf16.msra.mxu1 %v2235_v46  ;;  %v2386_v46 = vld [vmem:[%s3293_s3] ss:$8 sps:$4 sm:$0xff]  }
  0x30   :  { %1009 = vmatpush1.bf16.msra.mxu0 %v2236_v48  ;;  %969 = vmatprep.subr.bf16.mxu1 %v2237_v51  ;;  %v2308_v48 = vld [vmem:[%s3291_s1 + $0x148] ss:$16 sps:$4 sm:$0xff]   ;;  %v2394_v51 = vld [vmem:[%s3293_s3 + $0x24] ss:$8 sps:$4 sm:$0xff]  }
  0x31   :  { %1010 = vmatprep.subr.bf16.mxu0 %v2239_v53  ;;  %v2311_v53 = vld [vmem:[%s3291_s1 + $0x168] ss:$16 sps:$4 sm:$0xff]  }
  0x33   :  { %970 = vmatpush1.bf16.msra.mxu1 %v2241_v54  ;;  %v2316_v54 = vld [vmem:[%s3291_s1 + $0x18c] ss:$16 sps:$4 sm:$0xff]  }
  0x34   :  { %1011 = vmatpush1.bf16.msra.mxu0 %v2242_v55  ;;  %971 = vmatprep.subr.bf16.mxu1 %v2243_v56  ;;  %v2314_v55 = vld [vmem:[%s3291_s1 + $0x188] ss:$16 sps:$4 sm:$0xff]  }
  0x35   :  { %1012 = vmatprep.subr.bf16.mxu0 %v2245_v57  ;;  %v2392_v56 = vld [vmem:[%s3293_s3 + $0x20] ss:$8 sps:$4 sm:$0xff]   ;;  %v2397_v57 = vld [vmem:[%s3293_s3 + $0x34] ss:$8 sps:$4 sm:$0xff]  }
  0x37   :  { %972 = vmatpush1.bf16.msra.mxu1 %v2247_v58  ;;  %v2319_v58 = vld [vmem:[%s3291_s1 + $0x1ac] ss:$16 sps:$4 sm:$0xff]  }
  0x38   :  { %1013 = vmatpush1.bf16.msra.mxu0 %v2248_v59  ;;  %973 = vmatprep.subr.bf16.mxu1 %v2249_v60  ;;  %v2395_v59 = vld [vmem:[%s3293_s3 + $0x30] ss:$8 sps:$4 sm:$0xff]   ;;  %v2400_v60 = vld [vmem:[%s3293_s3 + $0x44] ss:$8 sps:$4 sm:$0xff]  }
  0x39   :  { %1014 = vmatprep.subr.bf16.mxu0 %v2251_v61  ;;  %v2317_v61 = vld [vmem:[%s3291_s1 + $0x1a8] ss:$16 sps:$4 sm:$0xff]  }
  0x3b   :  { %974 = vmatpush1.bf16.msra.mxu1 %v2253_v62  ;;  %v2322_v62 = vld [vmem:[%s3291_s1 + $0x1cc] ss:$16 sps:$4 sm:$0xff]  }
  0x3c   :  { %1015 = vmatpush1.bf16.msra.mxu0 %v2254_v63  ;;  %975 = vmatprep.subr.bf16.mxu1 %v2255_v0  ;;  %v2398_v63 = vld [vmem:[%s3293_s3 + $0x40] ss:$8 sps:$4 sm:$0xff]   ;;  %v2403_v0 = vld [vmem:[%s3293_s3 + $0x54] ss:$8 sps:$4 sm:$0xff]  }
  0x3d   :  { %1016 = vmatprep.subr.bf16.mxu0 %v2257_v1  ;;  %v2320_v1 = vld [vmem:[%s3291_s1 + $0x1c8] ss:$16 sps:$4 sm:$0xff]  }
  0x3f   :  { %976 = vmatpush1.bf16.msra.mxu1 %v2259_v2  ;;  %v2325_v2 = vld [vmem:[%s3291_s1 + $0x1ec] ss:$16 sps:$4 sm:$0xff]  }
  0x40   :  { %1017 = vmatpush1.bf16.msra.mxu0 %v2260_v3  ;;  %1068 = vmatprep.subr.bf16.mxu1 %v2271_v5  ;;  %v2401_v3 = vld [vmem:[%s3293_s3 + $0x50] ss:$8 sps:$4 sm:$0xff]  }
  0x41   :  { %1027 = vmatprep.subr.bf16.mxu0 %v2268_v4  ;;  %v2406_v4 = vld [vmem:[%s3293_s3 + $0x64] ss:$8 sps:$4 sm:$0xff]   ;;  %v2323_v5 = vld [vmem:[%s3291_s1 + $0x1e8] ss:$16 sps:$4 sm:$0xff]  }
  0x42   :  { %978 = vmatmul.mubr.bf16.vlgmr.msra.gmra.mrb[0].mxu1 %v2763_v6 }
  0x43   :  { %1019 = vmatmul.mubr.bf16.vlgmr.msra.gmra.mrb[0].mxu0 %v2765_v7  ;;  %1069 = vmatpush1.bf16.msra.mxu1 %v2269_v9  ;;  %v2404_v9 = vld [vmem:[%s3293_s3 + $0x60] ss:$8 sps:$4 sm:$0xff]  }
  0x44   :  { %1028 = vmatpush1.bf16.msra.mxu0 %v2266_v8  ;;  %1070 = vmatprep.subr.bf16.mxu1 %v2277_v11  ;;  %v2328_v8 = vld [vmem:[%s3291_s1 + $0x20c] ss:$16 sps:$4 sm:$0xff]   ;;  %v2326_v11 = vld [vmem:[%s3291_s1 + $0x208] ss:$16 sps:$4 sm:$0xff]  }
  0x45   :  { %1029 = vmatprep.subr.bf16.mxu0 %v2274_v10  ;;  %1059 = vmatprep.mubr.bf16.mxu0 %v2502_v16  ;;  %v2409_v10 = vld [vmem:[%s3293_s3 + $0x74] ss:$8 sps:$4 sm:$0xff]  }
  0x46   :  { %1100 = vmatprep.mubr.bf16.mxu1 %v2700_v49  ;;  %v2313_v49 = vld [vmem:[%s3291_s1 + $0x16c] ss:$16 sps:$4 sm:$0xff]  }
  0x47   :  { %1071 = vmatpush1.bf16.msra.mxu1 %v2275_v13  ;;  %v2407_v13 = vld [vmem:[%s3293_s3 + $0x70] ss:$8 sps:$4 sm:$0xff]  }
  0x48   :  { %1030 = vmatpush1.bf16.msra.mxu0 %v2272_v12  ;;  %1072 = vmatprep.subr.bf16.mxu1 %v2283_v15  ;;  %v2331_v12 = vld [vmem:[%s3291_s1 + $0x22c] ss:$16 sps:$4 sm:$0xff]   ;;  %v2329_v15 = vld [vmem:[%s3291_s1 + $0x228] ss:$16 sps:$4 sm:$0xff]  }
  0x49   :  { %1031 = vmatprep.subr.bf16.mxu0 %v2280_v14  ;;  %v2412_v14 = vld [vmem:[%s3293_s3 + $0x84] ss:$8 sps:$4 sm:$0xff]  }
  0x4b   :  { %1073 = vmatpush1.bf16.msra.mxu1 %v2281_v18  ;;  %v2337_v18 = vld [vmem:[%s3291_s1 + $0x26c] ss:$16 sps:$4 sm:$0xff]  }
  0x4c   :  { %1032 = vmatpush1.bf16.msra.mxu0 %v2278_v17  ;;  %1074 = vmatprep.subr.bf16.mxu1 %v2289_v20  ;;  %v2415_v17 = vld [vmem:[%s3293_s3 + $0x94] ss:$8 sps:$4 sm:$0xff]   ;;  %v2335_v20 = vld [vmem:[%s3291_s1 + $0x268] ss:$16 sps:$4 sm:$0xff]  }
  0x4d   :  { %1033 = vmatprep.subr.bf16.mxu0 %v2286_v19  ;;  %v2413_v19 = vld [vmem:[%s3293_s3 + $0x90] ss:$8 sps:$4 sm:$0xff]  }
  0x4f   :  { %1075 = vmatpush1.bf16.msra.mxu1 %v2287_v22  ;;  %v2338_v22 = vld [vmem:[%s3291_s1 + $0x288] ss:$16 sps:$4 sm:$0xff]  }
  0x50   :  { %1034 = vmatpush1.bf16.msra.mxu0 %v2284_v21  ;;  %1076 = vmatprep.subr.bf16.mxu1 %v2292_v23  ;;  %v2340_v21 = vld [vmem:[%s3291_s1 + $0x28c] ss:$16 sps:$4 sm:$0xff]  }
  0x51   :  { %1150 = vmatprep.subr.bf16.mxu0 %v2364_v30  ;;  %v2343_v23 = vld [vmem:[%s3291_s1 + $0x2ac] ss:$16 sps:$4 sm:$0xff]   ;;  %v2419_v30 = vld [vmem:[%s3293_s3 + $0xb0] ss:$8 sps:$4 sm:$0xff]  }
  0x53   :  { %2035 = vmatmul.mubr.msk.bf16.vlgmr.msra.gmra.mrb[0].mxu0 %vm941_vm0, %v2263_v24  ;;  %1077 = vmatpush1.bf16.msra.mxu1 %v2290_v25  ;;  %v2346_v25 = vld [vmem:[%s3291_s1 + $0x2cc] ss:$16 sps:$4 sm:$0xff]  }
  0x54   :  { %1182 = vmatprep.mubr.bf16.mxu0 %v2502_v16  ;;  %1078 = vmatprep.subr.bf16.mxu1 %v2295_v26  ;;  %v2334_v16 = vld [vmem:[%s3291_s1 + $0x24c] ss:$16 sps:$4 sm:$0xff]  }
  0x55   :  { %1151 = vmatpush1.bf16.msra.mxu0 %v2362_v29  ;;  %v2418_v26 = vld [vmem:[%s3293_s3 + $0xa4] ss:$8 sps:$4 sm:$0xff]  }
  0x56   :  { %1152 = vmatprep.subr.bf16.mxu0 %v2370_v34  ;;  %v2349_v29 = vld [vmem:[%s3291_s1 + $0x2ec] ss:$16 sps:$4 sm:$0xff]   ;;  %v2422_v34 = vld [vmem:[%s3293_s3 + $0xc0] ss:$8 sps:$4 sm:$0xff]  }
  0x57   :  { %1079 = vmatpush1.bf16.msra.mxu1 %v2293_v27  ;;  %v2416_v27 = vld [vmem:[%s3293_s3 + $0xa0] ss:$8 sps:$4 sm:$0xff]  }
  0x58   :  { %1080 = vmatprep.subr.bf16.mxu1 %v2298_v28  ;;  %v2344_v28 = vld [vmem:[%s3291_s1 + $0x2c8] ss:$16 sps:$4 sm:$0xff]  }
  0x59   :  { %1153 = vmatpush1.bf16.msra.mxu0 %v2368_v33  ;;  %v2347_v33 = vld [vmem:[%s3291_s1 + $0x2e8] ss:$16 sps:$4 sm:$0xff]  }
  0x5a   :  { %1154 = vmatprep.subr.bf16.mxu0 %v2376_v37  ;;  %v2350_v37 = vld [vmem:[%s3291_s1 + $0x308] ss:$16 sps:$4 sm:$0xff]  }
  0x5b   :  { %1081 = vmatpush1.bf16.msra.mxu1 %v2296_v31  ;;  %v2421_v31 = vld [vmem:[%s3293_s3 + $0xb4] ss:$8 sps:$4 sm:$0xff]  }
  0x5c   :  { %1082 = vmatprep.subr.bf16.mxu1 %v2301_v32  ;;  %v2424_v32 = vld [vmem:[%s3293_s3 + $0xc4] ss:$8 sps:$4 sm:$0xff]  }
  0x5d   :  { %1155 = vmatpush1.bf16.msra.mxu0 %v2374_v38  ;;  %v2425_v38 = vld [vmem:[%s3293_s3 + $0xd0] ss:$8 sps:$4 sm:$0xff]  }
  0x5e   :  { %1156 = vmatprep.subr.bf16.mxu0 %v2382_v39  ;;  %v2355_v39 = vld [vmem:[%s3291_s1 + $0x32c] ss:$16 sps:$4 sm:$0xff]  }
  0x5f   :  { %1083 = vmatpush1.bf16.msra.mxu1 %v2299_v35  ;;  %v2352_v35 = vld [vmem:[%s3291_s1 + $0x30c] ss:$16 sps:$4 sm:$0xff]  }
  0x60   :  { %1084 = vmatprep.subr.bf16.mxu1 %v2304_v36  ;;  %v2427_v36 = vld [vmem:[%s3293_s3 + $0xd4] ss:$8 sps:$4 sm:$0xff]  }
  0x61   :  { %1157 = vmatpush1.bf16.msra.mxu0 %v2380_v42  ;;  %v2430_v42 = vld [vmem:[%s3293_s3 + $0xe4] ss:$8 sps:$4 sm:$0xff]  }
  0x62   :  { %1595 = vmatprep.subr.bf16.mxu0 %v2388_v43  ;;  %v2428_v43 = vld [vmem:[%s3293_s3 + $0xe0] ss:$8 sps:$4 sm:$0xff]  }
  0x63   :  { %1085 = vmatpush1.bf16.msra.mxu1 %v2302_v40  ;;  %v2353_v40 = vld [vmem:[%s3291_s1 + $0x328] ss:$16 sps:$4 sm:$0xff]  }
  0x64   :  { %1086 = vmatprep.subr.bf16.mxu1 %v2307_v41  ;;  %2036 = vmatmul.mubr.msk.bf16.vlgmr.msra.gmra.mrb[4].mxu0 %vm941_vm0, %v2263_v24  ;;  %v2341_v24 = vld [vmem:[%s3291_s1 + $0x2a8] ss:$16 sps:$4 sm:$0xff]   ;;  %v2358_v41 = vld [vmem:[%s3291_s1 + $0x34c] ss:$16 sps:$4 sm:$0xff]  }
  0x65   :  { %1596 = vmatpush1.bf16.msra.mxu0 %v2386_v46  ;;  %v2433_v46 = vld [vmem:[%s3293_s3 + $0xf4] ss:$8 sps:$4 sm:$0xff]  }
  0x66   :  { %1597 = vmatprep.subr.bf16.mxu0 %v2391_v47  ;;  %v2431_v47 = vld [vmem:[%s3293_s3 + $0xf0] ss:$8 sps:$4 sm:$0xff]  }
  0x67   :  { %1087 = vmatpush1.bf16.msra.mxu1 %v2305_v44  ;;  %v2356_v44 = vld [vmem:[%s3291_s1 + $0x348] ss:$16 sps:$4 sm:$0xff]  }
  0x68   :  { %1088 = vmatprep.subr.bf16.mxu1 %v2310_v45  ;;  %v2361_v45 = vld [vmem:[%s3291_s1 + $0x36c] ss:$16 sps:$4 sm:$0xff]  }
  0x69   :  { %1598 = vmatpush1.bf16.msra.mxu0 %v2389_v50  ;;  %v2436_v50 = vld [vmem:[%s3293_s3 + $0x104] ss:$8 sps:$4 sm:$0xff]  }
  0x6a   :  { %1599 = vmatprep.subr.bf16.mxu0 %v2394_v51  ;;  %v2365_v51 = vld [vmem:[%s3291_s1 + $0x388] ss:$16 sps:$4 sm:$0xff]  }
  0x6b   :  { %1089 = vmatpush1.bf16.msra.mxu1 %v2308_v48  ;;  %v2359_v48 = vld [vmem:[%s3291_s1 + $0x368] ss:$16 sps:$4 sm:$0xff]  }
  0x6c   :  { %1090 = vmatprep.subr.bf16.mxu1 %v2313_v49  ;;  %v2367_v49 = vld [vmem:[%s3291_s1 + $0x38c] ss:$16 sps:$4 sm:$0xff]  }
  0x6d   :  { %1600 = vmatpush1.bf16.msra.mxu0 %v2392_v56  ;;  %v2377_v56 = vld [vmem:[%s3291_s1 + $0x3c8] ss:$16 sps:$4 sm:$0xff]  }
  0x6e   :  { %1601 = vmatprep.subr.bf16.mxu0 %v2397_v57  ;;  %v2385_v57 = vld [vmem:[%s3291_s1 + $0x3ec] ss:$16 sps:$4 sm:$0xff]  }
  0x6f   :  { %1091 = vmatpush1.bf16.msra.mxu1 %v2311_v53  ;;  %v2373_v53 = vld [vmem:[%s3291_s1 + $0x3ac] ss:$16 sps:$4 sm:$0xff]  }
  0x70   :  { %1092 = vmatprep.subr.bf16.mxu1 %v2316_v54  ;;  %v2371_v54 = vld [vmem:[%s3291_s1 + $0x3a8] ss:$16 sps:$4 sm:$0xff]  }
  0x71   :  { %1602 = vmatpush1.bf16.msra.mxu0 %v2395_v59  ;;  %v184_v59 = vlaneseq }
  0x72   :  { %1603 = vmatprep.subr.bf16.mxu0 %v2400_v60 }
  0x73   :  { %1093 = vmatpush1.bf16.msra.mxu1 %v2314_v55  ;;  %v2379_v55 = vld [vmem:[%s3291_s1 + $0x3cc] ss:$16 sps:$4 sm:$0xff]  }
  0x74   :  { %1094 = vmatprep.subr.bf16.mxu1 %v2319_v58  ;;  %v2383_v58 = vld [vmem:[%s3291_s1 + $0x3e8] ss:$16 sps:$4 sm:$0xff]  }
  0x75   :  { %1604 = vmatpush1.bf16.msra.mxu0 %v2398_v63  ;;  %v3111_v63 = vshrl.u32 %v184_v59, 7  ;;  %v2475_v59 = vld [vmem:[%s3293_s3 + $0x1d4] ss:$8 sps:$4 sm:$0xff]  }
  0x76   :  { %1605 = vmatprep.subr.bf16.mxu0 %v2403_v0 }
  0x77   :  { %1095 = vmatpush1.bf16.msra.mxu1 %v2317_v61 }
  0x78   :  { %1096 = vmatprep.subr.bf16.mxu1 %v2322_v62 }
  0x79   :  { %1606 = vmatpush1.bf16.msra.mxu0 %v2401_v3  ;;  %v190_v3 = vsub.s32 1, %v3111_v63 }
  0x7a   :  { %1607 = vmatprep.subr.bf16.mxu0 %v2406_v4 }
  0x7b   :  { %1097 = vmatpush1.bf16.msra.mxu1 %v2320_v1  ;;  %v3114_v1 = vsub.s32 0, %v3111_v63 }
  0x7c   :  { %1098 = vmatprep.subr.bf16.mxu1 %v2325_v2  ;;  %v3119_v2 = vld [vmem:[%s3294_s2] sm:$0xf] }
  0x7d   :  { %1608 = vmatpush1.bf16.msra.mxu0 %v2404_v9  ;;  %v191_v4 = vrot.slane %v3119_v2, %v190_v3  ;;  %v2484_v9 = vld [vmem:[%s3295_s5 + $0x48] sm:$0xff]  }
  0x7e   :  { %1609 = vmatprep.subr.bf16.mxu0 %v2409_v10 }
  0x7f   :  { %1099 = vmatpush1.bf16.msra.mxu1 %v2323_v5  ;;  %v2482_v5 = vld [vmem:[%s3295_s5 + $0x40] sm:$0xff]  }
  0x80   :  { %1109 = vmatprep.subr.bf16.mxu1 %v2328_v8  ;;  %v2483_v8 = vld [vmem:[%s3295_s5] sm:$0xff]  }
  0x81   :  { %1610 = vmatpush1.bf16.msra.mxu0 %v2407_v13 }
  0x82   :  { %1101 = vmatmul.mubr.bf16.vlgmr.msra.gmra.mrb[4].mxu1 %v2763_v6  ;;  %v2410_v6 = vld [vmem:[%s3293_s3 + $0x80] ss:$8 sps:$4 sm:$0xff]   ;;  %1611 = vmatprep.subr.bf16.mxu0 %v2412_v14  ;;  %v2486_v14 = vld [vmem:[%s3295_s5 + $0x50] sm:$0xff]  }
  0x83   :  { %1110 = vmatpush1.bf16.msra.mxu1 %v2326_v11  ;;  %1141 = vmatprep.mubr.bf16.mxu1 %v2708_v52  ;;  %v2332_v52 = vld [vmem:[%s3291_s1 + $0x248] ss:$16 sps:$4 sm:$0xff]  }
  0x84   :  { %1111 = vmatprep.subr.bf16.mxu1 %v2331_v12  ;;  %v2485_v11 = vld [vmem:[%s3295_s5 + $0x8] sm:$0xff]  }
  0x85   :  { %1612 = vmatpush1.bf16.msra.mxu0 %v2410_v6 }
  0x86   :  { %1613 = vmatprep.subr.bf16.mxu0 %v2415_v17 }
  0x87   :  { %1112 = vmatpush1.bf16.msra.mxu1 %v2329_v15 }
  0x88   :  { %1113 = vmatprep.subr.bf16.mxu1 %v2334_v16 }
  0x89   :  { %1614 = vmatpush1.bf16.msra.mxu0 %v2413_v19 }
  0x8a   :  { %1615 = vmatprep.subr.bf16.mxu0 %v2418_v26  ;;  %v2489_v26 = vld [vmem:[%s3295_s5 + $0x18] sm:$0xff]  }
  0x8b   :  { %1114 = vmatpush1.bf16.msra.mxu1 %v2332_v52  ;;  %v2487_v52 = vld [vmem:[%s3295_s5 + $0x10] sm:$0xff]  }
  0x8c   :  { %1115 = vmatprep.subr.bf16.mxu1 %v2337_v18 }
  0x8d   :  { %1616 = vmatpush1.bf16.msra.mxu0 %v2416_v27  ;;  %v2437_v27 = vld [vmem:[%s3293_s3 + $0x110] ss:$8 sps:$4 sm:$0xff]  }
  0x8e   :  { %1617 = vmatprep.subr.bf16.mxu0 %v2421_v31  ;;  %v2492_v31 = vld [vmem:[%s3295_s5 + $0x68] sm:$0xff]  }
  0x8f   :  { %1116 = vmatpush1.bf16.msra.mxu1 %v2335_v20 }
  0x90   :  { %1117 = vmatprep.subr.bf16.mxu1 %v2340_v21  ;;  %v2488_v21 = vld [vmem:[%s3295_s5 + $0x58] sm:$0xff]  }
  0x91   :  { %1618 = vmatpush1.bf16.msra.mxu0 %v2419_v30  ;;  %v2491_v30 = vld [vmem:[%s3295_s5 + $0x20] sm:$0xff]  }
  0x92   :  { %1619 = vmatprep.subr.bf16.mxu0 %v2424_v32  ;;  %v2440_v32 = vld [vmem:[%s3293_s3 + $0x120] ss:$8 sps:$4 sm:$0xff]  }
  0x93   :  { %1118 = vmatpush1.bf16.msra.mxu1 %v2338_v22  ;;  %v2434_v22 = vld [vmem:[%s3293_s3 + $0x100] ss:$8 sps:$4 sm:$0xff]  }
  0x94   :  { %1119 = vmatprep.subr.bf16.mxu1 %v2343_v23 }
  0x95   :  { %1620 = vmatpush1.bf16.msra.mxu0 %v2422_v34  ;;  %v2493_v34 = vld [vmem:[%s3295_s5 + $0x28] sm:$0xff]  }
  0x96   :  { %1621 = vmatprep.subr.bf16.mxu0 %v2427_v36  ;;  %v2448_v36 = vld [vmem:[%s3293_s3 + $0x144] ss:$8 sps:$4 sm:$0xff]  }
  0x97   :  { %1120 = vmatpush1.bf16.msra.mxu1 %v2341_v24  ;;  %v2439_v24 = vld [vmem:[%s3293_s3 + $0x114] ss:$8 sps:$4 sm:$0xff]  }
  0x98   :  { %1121 = vmatprep.subr.bf16.mxu1 %v2346_v25 }
  0x99   :  { %1622 = vmatpush1.bf16.msra.mxu0 %v2425_v38 }
  0x9a   :  { %1623 = vmatprep.subr.bf16.mxu0 %v2430_v42 }
  0x9b   :  { %1122 = vmatpush1.bf16.msra.mxu1 %v2344_v28  ;;  %v2490_v28 = vld [vmem:[%s3295_s5 + $0x60] sm:$0xff]  }
  0x9c   :  { %1123 = vmatprep.subr.bf16.mxu1 %v2349_v29  ;;  %v2442_v29 = vld [vmem:[%s3293_s3 + $0x124] ss:$8 sps:$4 sm:$0xff]  }
  0x9d   :  { %1624 = vmatpush1.bf16.msra.mxu0 %v2428_v43  ;;  %v2449_v43 = vld [vmem:[%s3293_s3 + $0x150] ss:$8 sps:$4 sm:$0xff]  }
  0x9e   :  { %1625 = vmatprep.subr.bf16.mxu0 %v2433_v46  ;;  %v2457_v46 = vld [vmem:[%s3293_s3 + $0x174] ss:$8 sps:$4 sm:$0xff]  }
  0x9f   :  { %1124 = vmatpush1.bf16.msra.mxu1 %v2347_v33  ;;  %v2445_v33 = vld [vmem:[%s3293_s3 + $0x134] ss:$8 sps:$4 sm:$0xff]  }
  0xa0   :  { %1125 = vmatprep.subr.bf16.mxu1 %v2352_v35  ;;  %v2443_v35 = vld [vmem:[%s3293_s3 + $0x130] ss:$8 sps:$4 sm:$0xff]  }
  0xa1   :  { %1626 = vmatpush1.bf16.msra.mxu0 %v2431_v47  ;;  %v2455_v47 = vld [vmem:[%s3293_s3 + $0x170] ss:$8 sps:$4 sm:$0xff]  }
  0xa2   :  { %1636 = vmatprep.subr.bf16.mxu0 %v2436_v50  ;;  %v2463_v50 = vld [vmem:[%s3293_s3 + $0x194] ss:$8 sps:$4 sm:$0xff]  }
  0xa3   :  { %1126 = vmatpush1.bf16.msra.mxu1 %v2350_v37  ;;  %v2446_v37 = vld [vmem:[%s3293_s3 + $0x140] ss:$8 sps:$4 sm:$0xff]  }
  0xa4   :  { %1127 = vmatprep.subr.bf16.mxu1 %v2355_v39  ;;  %v2451_v39 = vld [vmem:[%s3293_s3 + $0x154] ss:$8 sps:$4 sm:$0xff]  }
  0xa7   :  { %1128 = vmatpush1.bf16.msra.mxu1 %v2353_v40 }
  0xa8   :  { %1129 = vmatprep.subr.bf16.mxu1 %v2358_v41 }
  0xab   :  { %1130 = vmatpush1.bf16.msra.mxu1 %v2356_v44  ;;  %v2454_v44 = vld [vmem:[%s3293_s3 + $0x164] ss:$8 sps:$4 sm:$0xff]  }
  0xac   :  { %1131 = vmatprep.subr.bf16.mxu1 %v2361_v45  ;;  %v2452_v45 = vld [vmem:[%s3293_s3 + $0x160] ss:$8 sps:$4 sm:$0xff]  }
  0xaf   :  { %1132 = vmatpush1.bf16.msra.mxu1 %v2359_v48  ;;  %v2460_v48 = vld [vmem:[%s3293_s3 + $0x184] ss:$8 sps:$4 sm:$0xff]  }
  0xb0   :  { %1133 = vmatprep.subr.bf16.mxu1 %v2367_v49  ;;  %v2458_v49 = vld [vmem:[%s3293_s3 + $0x180] ss:$8 sps:$4 sm:$0xff]  }
  0xb3   :  { %1134 = vmatpush1.bf16.msra.mxu1 %v2365_v51  ;;  %v2461_v51 = vld [vmem:[%s3293_s3 + $0x190] ss:$8 sps:$4 sm:$0xff]  }
  0xb4   :  { %1135 = vmatprep.subr.bf16.mxu1 %v2373_v53  ;;  %v2466_v53 = vld [vmem:[%s3293_s3 + $0x1a4] ss:$8 sps:$4 sm:$0xff]  }
  0xb7   :  { %1136 = vmatpush1.bf16.msra.mxu1 %v2371_v54  ;;  %v2464_v54 = vld [vmem:[%s3293_s3 + $0x1a0] ss:$8 sps:$4 sm:$0xff]  }
  0xb8   :  { %1137 = vmatprep.subr.bf16.mxu1 %v2379_v55  ;;  %v2469_v55 = vld [vmem:[%s3293_s3 + $0x1b4] ss:$8 sps:$4 sm:$0xff]  }
  0xbb   :  { %1138 = vmatpush1.bf16.msra.mxu1 %v2377_v56  ;;  %v2467_v56 = vld [vmem:[%s3293_s3 + $0x1b0] ss:$8 sps:$4 sm:$0xff]  }
  0xbc   :  { %1139 = vmatprep.subr.bf16.mxu1 %v2385_v57  ;;  %v2472_v57 = vld [vmem:[%s3293_s3 + $0x1c4] ss:$8 sps:$4 sm:$0xff]  }
  0xbf   :  { %1140 = vmatpush1.bf16.msra.mxu1 %v2383_v58  ;;  %v2470_v58 = vld [vmem:[%s3293_s3 + $0x1c0] ss:$8 sps:$4 sm:$0xff]  }
  0xc0   :  { %2120 = vmatprep.subr.bf16.mxu1 %v2482_v5  ;;  %v198_v5 = vsub.s32 3, %v3111_v63 }
  0xc2   :  { %1142 = vmatmul.mubr.bf16.vlgmr.msra.gmra.mrb[4].mxu1 %v2765_v7  ;;  %v187_v7 = vrot.slane %v3119_v2, %v3114_v1 }
  0xc3   :  { %2121 = vmatpush3.bf16.msra.mxu1 %v2483_v8 }
  0xc4   :  { %2122 = vmatprep.subr.bf16.mxu1 %v2484_v9  ;;  %v199_v9 = vrot.slane %v3119_v2, %v198_v5 }
  0xc7   :  { %2123 = vmatpush3.bf16.msra.mxu1 %v2485_v11 }
  0xc8   :  { %2124 = vmatprep.subr.bf16.mxu1 %v2486_v14 }
  0xcb   :  { %2125 = vmatpush3.bf16.msra.mxu1 %v2487_v52 }
  0xcc   :  { %2126 = vmatprep.subr.bf16.mxu1 %v2488_v21  ;;  %v2496_v21 = vld [vmem:[%s3295_s5 + $0x78] sm:$0xff]  }
  0xcf   :  { %2127 = vmatpush3.bf16.msra.mxu1 %v2489_v26 }
  0xd0   :  { %2128 = vmatprep.subr.bf16.mxu1 %v2490_v28 }
  0xd3   :  { %2129 = vmatpush3.bf16.msra.mxu1 %v2491_v30 }
  0xd4   :  { %2130 = vmatprep.subr.bf16.mxu1 %v2492_v31 }
  0xd7   :  { %2131 = vmatpush3.bf16.msra.mxu1 %v2493_v34 }
 0x115   :  { %v979_v60 = vpop.f32.mrb[0].mxu1 }
 0x116   :  { %v981_v61 = vpop.f32.mrb[1].mxu1  ;;  %v980_v10 = vadd.f32 %v979_v60, %v187_v7  ;;  %v2473_v60 = vld [vmem:[%s3293_s3 + $0x1d0] ss:$8 sps:$4 sm:$0xff]  }
 0x117   :  { %v983_v62 = vpop.f32.mrb[2].mxu1  ;;  %v982_v12 = vadd.f32 %v981_v61, %v191_v4  ;;  %v2478_v61 = vld [vmem:[%s3293_s3 + $0x1e4] ss:$8 sps:$4 sm:$0xff]   ;;  %v2479_v7 = vld [vmem:[%s3293_s3 + $0x1f0] ss:$8 sps:$4 sm:$0xff]   ;;  %v194_v4 = vsub.s32 2, %v3111_v63 }
 0x118   :  { %v984_v0 = vpop.f32.mrb[3].mxu1  ;;  %v2476_v62 = vld [vmem:[%s3293_s3 + $0x1e0] ss:$8 sps:$4 sm:$0xff]  }
 0x119   :  { %v2481_v0 = vld [vmem:[%s3293_s3 + $0x1f4] ss:$8 sps:$4 sm:$0xff]   ;;  %v195_v8 = vrot.slane %v3119_v2, %v194_v4  ;;  %v1857_v63 = vld [vmem:[%s3298_s7] sm:$0x1] }
 0x11a   :  { %v2495_v2 = vld [vmem:[%s3295_s5 + $0x30] sm:$0xff]  }
 0x126   :  { %v1061_v13 = vpop.f32.mrb[0].mxu0 }
 0x127   :  { %v2143_v15 = vadd.f32 %v1061_v13, %v980_v10  ;;  %v1063_v16 = vpop.f32.mrb[1].mxu0 }
 0x128   :  { %v2145_v6 = vadd.f32 %v1063_v16, %v982_v12  ;;  %v1065_v17 = vpop.f32.mrb[2].mxu0 }
 0x129   :  { %v1191_v18 = vmax.f32 %v2143_v15, 0.0  ;;  %v1066_v19 = vpop.f32.mrb[3].mxu0 }
 0x12a   :  { %v1192_v20 = vmax.f32 %v2145_v6, 0.0 }
 0x12b   :  { %v1260_v25 = vpack.c.bf16 %v1191_v18, %v1191_v18 }
 0x12c   :  { %v1261_v23 = vpack.c.bf16 %v1192_v20, %v1192_v20  ;;  %v2494_v20 = vld [vmem:[%s3295_s5 + $0x70] sm:$0xff]  }
 0x12d   :  { %2132 = vmatprep.subr.bf16.mxu1 %v2494_v20 }
 0x12e   :  { %1627 = vmatprep.mubr.bf16.mxu0 %v1261_v23  ;;  %2133 = vmatpush3.bf16.msra.mxu1 %v2495_v2  ;;  %v1259_v23 = vld [vmem:[%s3296_s4] sm:$0x3] }
 0x12f   :  { %1628 = vmatmul.mubr.bf16.vlgmr.msra.gmra.mrb[8].mxu0 %v1260_v25  ;;  %2134 = vmatprep.subr.bf16.mxu1 %v2496_v21  ;;  %v1272_v25 = vrot.slane %v1259_v23, %v190_v3 }
 0x130   :  { %1637 = vmatpush1.bf16.msra.mxu0 %v2434_v22  ;;  %v2497_v22 = vld [vmem:[%s3295_s5 + $0x38] sm:$0xff]  }
 0x131   :  { %1638 = vmatprep.subr.bf16.mxu0 %v2439_v24  ;;  %v1268_v24 = vrot.slane %v1259_v23, %v3114_v1 }
 0x132   :  { %2135 = vmatpush3.bf16.msra.mxu1 %v2497_v22 }
 0x134   :  { %1639 = vmatpush1.bf16.msra.mxu0 %v2437_v27 }
 0x135   :  { %1640 = vmatprep.subr.bf16.mxu0 %v2442_v29 }
 0x137   :  { %v1184_v38 = vpop.f32.mrb[4].mxu0 }
 0x138   :  { %1641 = vmatpush1.bf16.msra.mxu0 %v2440_v32  ;;  %v1186_v40 = vpop.f32.mrb[5].mxu0 }
 0x139   :  { %1642 = vmatprep.subr.bf16.mxu0 %v2445_v33  ;;  %v1188_v41 = vpop.f32.mrb[6].mxu0 }
 0x13a   :  { %v1189_v42 = vpop.f32.mrb[7].mxu0 }
 0x13c   :  { %1643 = vmatpush1.bf16.msra.mxu0 %v2443_v35 }
 0x13d   :  { %1644 = vmatprep.subr.bf16.mxu0 %v2448_v36  ;;  %v14_v36 = vstv %s3297_s8 }
 0x13e   :  { %15 = vst [vmem:[#allocation2] sm:$0x1] %v14_v36 }
 0x140   :  { %1645 = vmatpush1.bf16.msra.mxu0 %v2446_v37  ;;  %v1858_v37 = vunpack.c.l.bf16 %v1857_v63 }
 0x141   :  { %1646 = vmatprep.subr.bf16.mxu0 %v2451_v39  ;;  %v2101_v39 = vld [vmem:[%s3299_s6] ss:$0 sm:$0xff] }
 0x144   :  { %1647 = vmatpush1.bf16.msra.mxu0 %v2449_v43 }
 0x145   :  { %1648 = vmatprep.subr.bf16.mxu0 %v2454_v44  ;;  %v1863_v44 = vrot.slane %v1858_v37, %v3114_v1 }
 0x148   :  { %1649 = vmatpush1.bf16.msra.mxu0 %v2452_v45 }
 0x149   :  { %1650 = vmatprep.subr.bf16.mxu0 %v2457_v46 }
 0x14c   :  { %1651 = vmatpush1.bf16.msra.mxu0 %v2455_v47  ;;  %v2118_v47 = vld [vmem:[#allocation2] ss:$0 sm:$0xff] }
 0x14d   :  { %1652 = vmatprep.subr.bf16.mxu0 %v2460_v48 }
 0x150   :  { %1653 = vmatpush1.bf16.msra.mxu0 %v2458_v49 }
 0x151   :  { %1654 = vmatprep.subr.bf16.mxu0 %v2463_v50 }
 0x154   :  { %1655 = vmatpush1.bf16.msra.mxu0 %v2461_v51 }
 0x155   :  { %1656 = vmatprep.subr.bf16.mxu0 %v2466_v53 }
 0x158   :  { %1657 = vmatpush1.bf16.msra.mxu0 %v2464_v54 }
 0x159   :  { %1658 = vmatprep.subr.bf16.mxu0 %v2469_v55 }
 0x15c   :  { %1659 = vmatpush1.bf16.msra.mxu0 %v2467_v56 }
 0x15d   :  { %1660 = vmatprep.subr.bf16.mxu0 %v2472_v57 }
 0x160   :  { %1661 = vmatpush1.bf16.msra.mxu0 %v2470_v58 }
 0x161   :  { %1662 = vmatprep.subr.bf16.mxu0 %v2475_v59 }
 0x164   :  { %1663 = vmatpush1.bf16.msra.mxu0 %v2473_v60 }
 0x165   :  { %1664 = vmatprep.subr.bf16.mxu0 %v2478_v61 }
 0x168   :  { %1665 = vmatpush1.bf16.msra.mxu0 %v2476_v62 }
 0x169   :  { %1666 = vmatprep.subr.bf16.mxu0 %v2481_v0 }
 0x16c   :  { %1667 = vmatpush1.bf16.msra.mxu0 %v2479_v7 }
 0x195   :  { %v1143_v10 = vpop.f32.mrb[4].mxu1 }
 0x196   :  { %v2146_v11 = vadd.f32 %v1143_v10, %v195_v8  ;;  %v1145_v12 = vpop.f32.mrb[5].mxu1 }
 0x197   :  { %v2148_v13 = vadd.f32 %v1145_v12, %v199_v9  ;;  %v1147_v14 = vpop.f32.mrb[6].mxu1 }
 0x198   :  { %v2147_v15 = vadd.f32 %v2146_v11, %v1184_v38  ;;  %v1148_v16 = vpop.f32.mrb[7].mxu1 }
 0x199   :  { %v2149_v6 = vadd.f32 %v2148_v13, %v1186_v40 }
 0x19a   :  { %v1193_v17 = vmax.f32 %v2147_v15, 0.0 }
 0x19b   :  { %v1194_v52 = vmax.f32 %v2149_v6, 0.0 }
 0x19c   :  { %v1262_v19 = vpack.c.bf16 %v1193_v17, %v1193_v17 }
 0x19d   :  { %v1263_v18 = vpack.c.bf16 %v1194_v52, %v1194_v52 }
 0x19f   :  { %1668 = vmatprep.mubr.bf16.mxu0 %v1263_v18 }
 0x1a0   :  { %1669 = vmatmul.mubr.bf16.vlgmr.msra.gmra.mrb[8].mxu0 %v1262_v19 }
 0x273   :  { %v1670_v26 = vpop.f32.mrb[8].mxu0 }
 0x274   :  { %v2150_v27 = vadd.f32 %v1670_v26, %v1268_v24  ;;  %v1672_v28 = vpop.f32.mrb[9].mxu0 }
 0x275   :  { %v2151_v29 = vadd.f32 %v1672_v28, %v1272_v25  ;;  %v1674_v30 = vpop.f32.mrb[10].mxu0 }
 0x276   :  { %v1677_v31 = vmax.f32 %v2150_v27, 0.0  ;;  %v1675_v32 = vpop.f32.mrb[11].mxu0 }
 0x277   :  { %v1678_v33 = vmax.f32 %v2151_v29, 0.0 }
 0x278   :  { %v1712_v35 = vpack.c.bf16 %v1677_v31, %v1677_v31 }
 0x279   :  { %v1713_v34 = vpack.c.bf16 %v1678_v33, %v1678_v33 }
 0x27b   :  { %1848 = vmatprep.mubr.bf16.mxu1 %v1713_v34 }
 0x27c   :  { %1849 = vmatmul.mubr.bf16.vlgmr.msra.gmra.mrb[8].mxu1 %v1712_v35 }
 0x34f   :  { %v2136_v3 = vpop.f32.mrb[8].mxu1 }
 0x350   :  { %v2137_v38 = vpop.f32.mrb[9].mxu1 }
 0x351   :  { %v2138_v40 = vadd.f32 %v2137_v38, %v2136_v3  ;;  %v2139_v41 = vpop.f32.mrb[10].mxu1 }
 0x352   :  { %v2140_v42 = vpop.f32.mrb[11].mxu1 }
 0x353   :  { %v1851_v43 = vadd.f32 %v2138_v40, %v2101_v39 }
 0x355   :  { %v1856_v45 = vmax.f32 %v1851_v43, 0.0 }
 0x357   :  { %v1864_v46 = vmul.f32 %v1863_v44, %v1856_v45 }
 0x359   :  { %1865 = vadd.xlane.f32.xlu0 %v1864_v46 }
 0x3e6   :  { %v1866_v48 = vpop.xlane.xlu0 %1865 }
 0x3e7   :  { %v1873_v49 = vadd.f32 %v2118_v47, %v1866_v48 }
 0x3e9   :  { %v2119_v50 = vmul.f32 -1.442695, %v1873_v49 }
 0x3eb   :  { %2498 = vpow2.f32 %v2119_v50 }
 0x3f5   :  { %v2499_v51 = vpop.eup %2498 }
 0x3f6   :  { %v1877_v53 = vadd.f32 1.0, %v2499_v51 }
 0x3f8   :  { %2500 = vrcp.f32 %v1877_v53 }
 0x402   :  { %v2501_v54 = vpop.eup %2500 }
 0x403   :  { %1881 = vst.msk [vmem:[%s3300_s9] sm:$0xff] %vm1880_vm1, %v2501_v54 }

</bundles_post_ra>
